<compile_context>
chip_gen: v6e
topology: v6e:2x2x1
jax: 0.10.0
libtpu: 0.0.40
codegen_flags: <defaults>
</compile_context>

<pallas_src>
import functools

import numpy as np

import jax
import jax.numpy as jnp
from jax import lax
from jax.experimental import pallas as pl
from jax.experimental.pallas import tpu as pltpu


# ---------------------------------------------------------------------------
# Single fused Pallas kernel
# ---------------------------------------------------------------------------
def _autoencoder_fused_kernel(x_ref, m1_ref, bb1_ref, m2_ref, bb2_ref,
                              m3_ref, bb3_ref, wl_ref, bl_ref, boost_ref,
                              o_ref, *, batch, k, n):
    """Whole forward on VMEM-resident data, batch stacked on the sublane axis.

    Activations use a planar 2-D layout A[y*B + b, x*Cin + ci] (y-major,
    batch-minor rows).  Each VALID 5x5 conv is 5 batched GEMMs (one per kernel
    row dy) against init-time block-Toeplitz matrices; the per-dy input window
    is the contiguous static sublane slice A[dy*B : (dy+OH)*B, :], so the whole
    batch goes through the MXU in 5 pushes per layer.
    """
    B = batch
    npad = o_ref.shape[1]

    def conv5x5_relu(a, m_ref, b_ref):
        oh = a.shape[0] // B - 4
        acc = None
        for dy in range(5):                      # static unroll: 5 GEMMs/layer
            lhs = a[dy * B:(dy + oh) * B, :]     # contiguous (oh*B, K) window
            part = jnp.dot(lhs, m_ref[dy], preferred_element_type=jnp.float32)
            acc = part if acc is None else acc + part
        return jnp.maximum(acc + b_ref[...], 0.0)

    a = x_ref[...]                               # (H*B,      W)        Cin = 1
    a = conv5x5_relu(a, m1_ref, bb1_ref)         # ((H-4)*B,  (W-4)*2)
    a = conv5x5_relu(a, m2_ref, bb2_ref)         # ((H-8)*B,  (W-8)*4)
    a = conv5x5_relu(a, m3_ref, bb3_ref)         # ((H-12)*B, (W-12)*8)

    # lin1: the PyTorch NCHW flatten permutation is folded into wl's row order
    # at init; the bottleneck dim is zero-padded to a lane-dense 128.  This is
    # oh3 batched (B, 32)@(32, npad) dots accumulated into one (B, npad) value.
    oh3 = a.shape[0] // B
    c3w = a.shape[1]
    y_full = bl_ref[...]                         # (1, npad) -> broadcasts
    for y in range(oh3):
        y_full = y_full + jnp.dot(a[y * B:(y + 1) * B, :],
                                  wl_ref[y * c3w:(y + 1) * c3w, :],
                                  preferred_element_type=jnp.float32)
    # y_full: (B, npad)

    col = lax.broadcasted_iota(jnp.int32, (B, npad), 1)

    if k >= n:
        # KWinners degenerates to ReLU when k >= n (padding columns stay 0).
        o_ref[...] = jnp.where(col < n, jnp.maximum(y_full, 0.0),
                               0.0).astype(jnp.float32)
        return

    # boost = exp((k/n - dutyCycle) * boostStrength), precomputed at init time
    # (all-ones when boostStrength == 0, so multiplying is always exact).
    boosted = y_full * boost_ref[...]

    # Rank-based top-k (single pairwise pass): column i wins iff fewer than k
    # candidates j are strictly greater, or equal with a lower index (same tie
    # rule as iterative argmax extraction).  Only the n real columns are
    # candidates (j < n), so padded columns can never be selected.
    bj = boosted[:, :n, None]                              # (B, n, 1)
    bi = boosted[:, None, :]                               # (B, 1, npad)
    col_j = lax.broadcasted_iota(jnp.int32, (B, n, 1), 1)
    col_i = lax.broadcasted_iota(jnp.int32, (B, 1, npad), 2)
    before = (bj > bi) | ((bj == bi) & (col_j < col_i))    # (B, n, npad)
    cnt = jnp.sum(before.astype(jnp.float32), axis=1)      # (B, npad)
    winners = (cnt < k) & (col < n)
    o_ref[...] = jnp.where(winners, 1.0, 0.0).astype(jnp.float32)


# ---------------------------------------------------------------------------
# Wrapper (one gridless pallas_call, everything full-block in VMEM)
# ---------------------------------------------------------------------------
def autoencoder_forward(x_nchw, packed, *, k, bottleneck):
    B, _, H, W = x_nchw.shape
    # Batch-on-sublane stacking: row index = y*B + b (y-major, batch-minor).
    x_stacked = jnp.transpose(x_nchw.reshape(B, H, W), (1, 0, 2)).reshape(H * B, W)
    npad = packed["wlin"].shape[1]

    kernel = functools.partial(_autoencoder_fused_kernel,
                               batch=int(B), k=int(k), n=int(bottleneck))
    vmem = pl.BlockSpec(memory_space=pltpu.MemorySpace.VMEM)

    # Advisory cost estimate: this kernel is latency-bound (~100 KFLOP/sample).
    oh = (H - 4, H - 8, H - 12)
    flops = sum(2 * 5 * (o * B) * int(packed[m].shape[1]) * int(packed[m].shape[2])
                for o, m in zip(oh, ("m1", "m2", "m3")))
    flops += 2 * B * int(packed["wlin"].shape[0]) * int(npad)
    flops += 3 * B * int(bottleneck) * int(npad)          # KWinners rank pass
    bytes_accessed = 4 * (int(x_stacked.size) + B * int(npad)
                          + sum(int(v.size) for v in packed.values()))

    out = pl.pallas_call(
        kernel,
        out_shape=jax.ShapeDtypeStruct((B, npad), jnp.float32),
        in_specs=[vmem] * 10,
        out_specs=vmem,
        cost_estimate=pl.CostEstimate(flops=int(flops), transcendentals=0,
                                      bytes_accessed=int(bytes_accessed)),
    )(x_stacked, packed["m1"], packed["bb1"], packed["m2"], packed["bb2"],
      packed["m3"], packed["bb3"], packed["wlin"], packed["blin"],
      packed["boost"])
    return out[:, :bottleneck]


# ---------------------------------------------------------------------------
# Init-time parameter packing (all layout transforms hoisted out of forward)
# ---------------------------------------------------------------------------
def _conv_toeplitz(w_oihw, w_in):
    """Per-dy block-Toeplitz GEMM matrices for a VALID 5x5 conv on the planar
    (rows=y, cols=x*Cin+ci) layout:  M[dy][(x+dx)*Cin+ci, x*Cout+co] = w[co,ci,dy,dx]."""
    w = np.asarray(w_oihw, np.float32)
    cout, cin, kh, kw = w.shape
    ow = w_in - kw + 1
    m = np.zeros((kh, w_in * cin, ow * cout), np.float32)
    for dy in range(kh):
        for dx in range(kw):
            wt = w[:, :, dy, dx].T               # (cin, cout)
            for x in range(ow):
                m[dy, (x + dx) * cin:(x + dx) * cin + cin,
                      x * cout:(x + 1) * cout] = wt
    return m


def pack_params(params, width, height, bottleneck, k, boost_strength):
    ow1 = width - 4
    ow2 = width - 8
    oh3, ow3 = height - 12, width - 12
    c3 = int(params["w3"].shape[0])              # 8
    hidden = oh3 * ow3 * c3
    npad = ((bottleneck + 127) // 128) * 128

    b1 = np.asarray(params["b1"], np.float32)
    b2 = np.asarray(params["b2"], np.float32)
    b3 = np.asarray(params["b3"], np.float32)

    # lin1 weight: fold the PyTorch NCHW flatten permutation (h = co*OH*OW +
    # y*OW + x) into the row order (y, x*C3 + co) used by the kernel, and pad
    # the bottleneck dim to a lane-dense multiple of 128.
    wl = np.asarray(params["wl1"], np.float32)            # (bottleneck, hidden)
    w_h = wl.T.reshape(c3, oh3, ow3, bottleneck)          # [co, y, x, j]
    w_perm = np.transpose(w_h, (1, 2, 0, 3))              # [y, x, co, j]
    wlin = np.zeros((oh3, ow3 * c3, npad), np.float32)
    wlin[:, :, :bottleneck] = w_perm.reshape(oh3, ow3 * c3, bottleneck)
    wlin = wlin.reshape(hidden, npad)

    blin = np.zeros((1, npad), np.float32)
    blin[0, :bottleneck] = np.asarray(params["bl1"], np.float32)

    # Hoisted KWinners boost factors (exactly 1.0 when boost_strength == 0).
    boost = np.ones((1, npad), np.float32)
    if boost_strength > 0.0:
        duty = np.asarray(params["duty"], np.float32)
        boost[0, :bottleneck] = np.exp(
            (float(k) / float(bottleneck) - duty) * float(boost_strength))

    packed = {
        "m1": _conv_toeplitz(params["w1"], width),        # (5, 16, 24)
        "bb1": np.tile(b1, ow1)[None, :],                 # (1, 24)
        "m2": _conv_toeplitz(params["w2"], ow1),          # (5, 24, 32)
        "bb2": np.tile(b2, ow2)[None, :],                 # (1, 32)
        "m3": _conv_toeplitz(params["w3"], ow2),          # (5, 32, 32)
        "bb3": np.tile(b3, ow3)[None, :],                 # (1, 32)
        "wlin": wlin,                                     # (128, 128)
        "blin": blin,                                     # (1, 128)
        "boost": boost,                                   # (1, 128)
    }
    return {name: jnp.asarray(v) for name, v in packed.items()}


# ---------------------------------------------------------------------------
# Deterministic parameter initialization (PyTorch-like uniform bounds)
# ---------------------------------------------------------------------------
def init_params(key, width, height, bottleneck):
    hidden = (width - 12) * (height - 12) * 8
    ks = jax.random.split(key, 8)

    def unif(kk, shape, fan_in):
        bound = 1.0 / (fan_in ** 0.5)
        return jax.random.uniform(kk, shape, jnp.float32, -bound, bound)

    params = {
        "w1": unif(ks[0], (2, 1, 5, 5), 1 * 25),
        "b1": unif(ks[1], (2,), 1 * 25),
        "w2": unif(ks[2], (4, 2, 5, 5), 2 * 25),
        "b2": unif(ks[3], (4,), 2 * 25),
        "w3": unif(ks[4], (8, 4, 5, 5), 4 * 25),
        "b3": unif(ks[5], (8,), 4 * 25),
        "wl1": unif(ks[6], (bottleneck, hidden), hidden),
        "bl1": unif(ks[7], (bottleneck,), hidden),
        "duty": jnp.zeros((bottleneck,), jnp.float32),    # KWinners dutyCycle
    }
    return params, hidden


# ---------------------------------------------------------------------------
# Pure-JAX (XLA) reference of conv stack + lin1, used only for sanity checking
# ---------------------------------------------------------------------------
def _reference_lin_outputs(x_nchw, params):
    y = x_nchw
    for wn, bn in (("w1", "b1"), ("w2", "b2"), ("w3", "b3")):
        y = lax.conv_general_dilated(
            y, params[wn], window_strides=(1, 1), padding="VALID",
            dimension_numbers=("NCHW", "OIHW", "NCHW"))
        y = jnp.maximum(y + params[bn][None, :, None, None], 0.0)
    feat = y.reshape(y.shape[0], -1)
    return feat @ params["wl1"].T + params["bl1"]


# ---------------------------------------------------------------------------
# Main
# ---------------------------------------------------------------------------
if __name__ == "__main__":
    width = height = 16
    bottleneck = 32
    k = 8
    boost_strength = 1.0
    batch = 2

    key = jax.random.PRNGKey(0)
    kx, kp = jax.random.split(key)
    params, hidden = init_params(kp, width, height, bottleneck)
    packed = pack_params(params, width, height, bottleneck, k, boost_strength)

    x = jax.random.normal(kx, (batch, 1, height, width), jnp.float32)  # NCHW

    fwd = jax.jit(functools.partial(autoencoder_forward, k=k,
                                    bottleneck=bottleneck))
    out = jax.block_until_ready(fwd(x, packed))

    assert out.shape == (batch, bottleneck)
    # Each row of the KWinners output is a binary mask with exactly k ones.
    row_sums = np.asarray(jnp.sum(out, axis=1))
    assert np.all(row_sums == k), row_sums

    # Verify the selected winners against a pure-JAX reference of the same
    # math (tolerance-based so fp summation-order differences cannot flip it).
    ref_lin = np.asarray(_reference_lin_outputs(x, params))
    boost = np.exp((k / bottleneck - np.asarray(params["duty"])) * boost_strength)
    boosted_ref = ref_lin * boost
    sel = np.asarray(out) > 0.5
    for b in range(batch):
        chosen = boosted_ref[b][sel[b]]
        rest = boosted_ref[b][~sel[b]]
        assert chosen.shape[0] == k
        assert chosen.min() >= rest.max() - 1e-3, (chosen.min(), rest.max())

    print("KERNEL_OK")
</pallas_src>

<mosaic_0001>
module attributes {stable_mosaic.version = 11 : i64} {
  func.func @_autoencoder_fused_kernel(%arg0: memref<32x16xf32, #tpu.memory_space<vmem>>, %arg1: memref<5x16x24xf32, #tpu.memory_space<vmem>>, %arg2: memref<1x24xf32, #tpu.memory_space<vmem>>, %arg3: memref<5x24x32xf32, #tpu.memory_space<vmem>>, %arg4: memref<1x32xf32, #tpu.memory_space<vmem>>, %arg5: memref<5x32x32xf32, #tpu.memory_space<vmem>>, %arg6: memref<1x32xf32, #tpu.memory_space<vmem>>, %arg7: memref<128x128xf32, #tpu.memory_space<vmem>>, %arg8: memref<1x128xf32, #tpu.memory_space<vmem>>, %arg9: memref<1x128xf32, #tpu.memory_space<vmem>>, %arg10: memref<2x128xf32, #tpu.memory_space<vmem>>) attributes {dimension_semantics = [], scalar_prefetch = 0 : i64, scratch_operands = 0 : i64, tpu.core_type = #tpu.core_type<tc>} {
    %c0 = arith.constant 0 : index
    %c0_0 = arith.constant 0 : index
    %0 = vector.load %arg0[%c0, %c0_0] : memref<32x16xf32, #tpu.memory_space<vmem>>, vector<32x16xf32>
    %1 = vector.extract_strided_slice %0 {offsets = [0, 0], sizes = [24, 16], strides = [1, 1]} : vector<32x16xf32> to vector<24x16xf32>
    %c0_1 = arith.constant 0 : index
    %c0_2 = arith.constant 0 : index
    %c0_3 = arith.constant 0 : index
    %2 = vector.load %arg1[%c0_1, %c0_2, %c0_3] : memref<5x16x24xf32, #tpu.memory_space<vmem>>, vector<1x16x24xf32>
    %3 = vector.shape_cast %2 : vector<1x16x24xf32> to vector<16x24xf32>
    %cst = arith.constant dense<0.000000e+00> : vector<24x24xf32>
    %4 = tpu.matmul %1, %3, %cst {dimension_numbers = #tpu.dot_dimension_numbers<[1], [0], [0], [1], [0, 0, 1, 1], [], []>} : vector<24x16xf32>, vector<16x24xf32>, vector<24x24xf32> -> vector<24x24xf32>
    %5 = vector.extract_strided_slice %0 {offsets = [2, 0], sizes = [24, 16], strides = [1, 1]} : vector<32x16xf32> to vector<24x16xf32>
    %c1 = arith.constant 1 : index
    %c0_4 = arith.constant 0 : index
    %c0_5 = arith.constant 0 : index
    %6 = vector.load %arg1[%c1, %c0_4, %c0_5] : memref<5x16x24xf32, #tpu.memory_space<vmem>>, vector<1x16x24xf32>
    %7 = vector.shape_cast %6 : vector<1x16x24xf32> to vector<16x24xf32>
    %cst_6 = arith.constant dense<0.000000e+00> : vector<24x24xf32>
    %8 = tpu.matmul %5, %7, %cst_6 {dimension_numbers = #tpu.dot_dimension_numbers<[1], [0], [0], [1], [0, 0, 1, 1], [], []>} : vector<24x16xf32>, vector<16x24xf32>, vector<24x24xf32> -> vector<24x24xf32>
    %9 = arith.addf %4, %8 : vector<24x24xf32>
    %10 = vector.extract_strided_slice %0 {offsets = [4, 0], sizes = [24, 16], strides = [1, 1]} : vector<32x16xf32> to vector<24x16xf32>
    %c2 = arith.constant 2 : index
    %c0_7 = arith.constant 0 : index
    %c0_8 = arith.constant 0 : index
    %11 = vector.load %arg1[%c2, %c0_7, %c0_8] : memref<5x16x24xf32, #tpu.memory_space<vmem>>, vector<1x16x24xf32>
    %12 = vector.shape_cast %11 : vector<1x16x24xf32> to vector<16x24xf32>
    %cst_9 = arith.constant dense<0.000000e+00> : vector<24x24xf32>
    %13 = tpu.matmul %10, %12, %cst_9 {dimension_numbers = #tpu.dot_dimension_numbers<[1], [0], [0], [1], [0, 0, 1, 1], [], []>} : vector<24x16xf32>, vector<16x24xf32>, vector<24x24xf32> -> vector<24x24xf32>
    %14 = arith.addf %9, %13 : vector<24x24xf32>
    %15 = vector.extract_strided_slice %0 {offsets = [6, 0], sizes = [24, 16], strides = [1, 1]} : vector<32x16xf32> to vector<24x16xf32>
    %c3 = arith.constant 3 : index
    %c0_10 = arith.constant 0 : index
    %c0_11 = arith.constant 0 : index
    %16 = vector.load %arg1[%c3, %c0_10, %c0_11] : memref<5x16x24xf32, #tpu.memory_space<vmem>>, vector<1x16x24xf32>
    %17 = vector.shape_cast %16 : vector<1x16x24xf32> to vector<16x24xf32>
    %cst_12 = arith.constant dense<0.000000e+00> : vector<24x24xf32>
    %18 = tpu.matmul %15, %17, %cst_12 {dimension_numbers = #tpu.dot_dimension_numbers<[1], [0], [0], [1], [0, 0, 1, 1], [], []>} : vector<24x16xf32>, vector<16x24xf32>, vector<24x24xf32> -> vector<24x24xf32>
    %19 = arith.addf %14, %18 : vector<24x24xf32>
    %20 = vector.extract_strided_slice %0 {offsets = [8, 0], sizes = [24, 16], strides = [1, 1]} : vector<32x16xf32> to vector<24x16xf32>
    %c4 = arith.constant 4 : index
    %c0_13 = arith.constant 0 : index
    %c0_14 = arith.constant 0 : index
    %21 = vector.load %arg1[%c4, %c0_13, %c0_14] : memref<5x16x24xf32, #tpu.memory_space<vmem>>, vector<1x16x24xf32>
    %22 = vector.shape_cast %21 : vector<1x16x24xf32> to vector<16x24xf32>
    %cst_15 = arith.constant dense<0.000000e+00> : vector<24x24xf32>
    %23 = tpu.matmul %20, %22, %cst_15 {dimension_numbers = #tpu.dot_dimension_numbers<[1], [0], [0], [1], [0, 0, 1, 1], [], []>} : vector<24x16xf32>, vector<16x24xf32>, vector<24x24xf32> -> vector<24x24xf32>
    %24 = arith.addf %19, %23 : vector<24x24xf32>
    %c0_16 = arith.constant 0 : index
    %c0_17 = arith.constant 0 : index
    %25 = vector.load %arg2[%c0_16, %c0_17] : memref<1x24xf32, #tpu.memory_space<vmem>>, vector<1x24xf32>
    %26 = vector.broadcast %25 : vector<1x24xf32> to vector<24x24xf32>
    %27 = arith.addf %24, %26 : vector<24x24xf32>
    %cst_18 = arith.constant 0.000000e+00 : f32
    %28 = vector.broadcast %cst_18 : f32 to vector<24x24xf32>
    %29 = arith.maximumf %27, %28 : vector<24x24xf32>
    %30 = vector.extract_strided_slice %29 {offsets = [0, 0], sizes = [16, 24], strides = [1, 1]} : vector<24x24xf32> to vector<16x24xf32>
    %c0_19 = arith.constant 0 : index
    %c0_20 = arith.constant 0 : index
    %c0_21 = arith.constant 0 : index
    %31 = vector.load %arg3[%c0_19, %c0_20, %c0_21] : memref<5x24x32xf32, #tpu.memory_space<vmem>>, vector<1x24x32xf32>
    %32 = vector.shape_cast %31 : vector<1x24x32xf32> to vector<24x32xf32>
    %cst_22 = arith.constant dense<0.000000e+00> : vector<16x32xf32>
    %33 = tpu.matmul %30, %32, %cst_22 {dimension_numbers = #tpu.dot_dimension_numbers<[1], [0], [0], [1], [0, 0, 1, 1], [], []>} : vector<16x24xf32>, vector<24x32xf32>, vector<16x32xf32> -> vector<16x32xf32>
    %34 = vector.extract_strided_slice %29 {offsets = [2, 0], sizes = [16, 24], strides = [1, 1]} : vector<24x24xf32> to vector<16x24xf32>
    %c1_23 = arith.constant 1 : index
    %c0_24 = arith.constant 0 : index
    %c0_25 = arith.constant 0 : index
    %35 = vector.load %arg3[%c1_23, %c0_24, %c0_25] : memref<5x24x32xf32, #tpu.memory_space<vmem>>, vector<1x24x32xf32>
    %36 = vector.shape_cast %35 : vector<1x24x32xf32> to vector<24x32xf32>
    %cst_26 = arith.constant dense<0.000000e+00> : vector<16x32xf32>
    %37 = tpu.matmul %34, %36, %cst_26 {dimension_numbers = #tpu.dot_dimension_numbers<[1], [0], [0], [1], [0, 0, 1, 1], [], []>} : vector<16x24xf32>, vector<24x32xf32>, vector<16x32xf32> -> vector<16x32xf32>
    %38 = arith.addf %33, %37 : vector<16x32xf32>
    %39 = vector.extract_strided_slice %29 {offsets = [4, 0], sizes = [16, 24], strides = [1, 1]} : vector<24x24xf32> to vector<16x24xf32>
    %c2_27 = arith.constant 2 : index
    %c0_28 = arith.constant 0 : index
    %c0_29 = arith.constant 0 : index
    %40 = vector.load %arg3[%c2_27, %c0_28, %c0_29] : memref<5x24x32xf32, #tpu.memory_space<vmem>>, vector<1x24x32xf32>
    %41 = vector.shape_cast %40 : vector<1x24x32xf32> to vector<24x32xf32>
    %cst_30 = arith.constant dense<0.000000e+00> : vector<16x32xf32>
    %42 = tpu.matmul %39, %41, %cst_30 {dimension_numbers = #tpu.dot_dimension_numbers<[1], [0], [0], [1], [0, 0, 1, 1], [], []>} : vector<16x24xf32>, vector<24x32xf32>, vector<16x32xf32> -> vector<16x32xf32>
    %43 = arith.addf %38, %42 : vector<16x32xf32>
    %44 = vector.extract_strided_slice %29 {offsets = [6, 0], sizes = [16, 24], strides = [1, 1]} : vector<24x24xf32> to vector<16x24xf32>
    %c3_31 = arith.constant 3 : index
    %c0_32 = arith.constant 0 : index
    %c0_33 = arith.constant 0 : index
    %45 = vector.load %arg3[%c3_31, %c0_32, %c0_33] : memref<5x24x32xf32, #tpu.memory_space<vmem>>, vector<1x24x32xf32>
    %46 = vector.shape_cast %45 : vector<1x24x32xf32> to vector<24x32xf32>
    %cst_34 = arith.constant dense<0.000000e+00> : vector<16x32xf32>
    %47 = tpu.matmul %44, %46, %cst_34 {dimension_numbers = #tpu.dot_dimension_numbers<[1], [0], [0], [1], [0, 0, 1, 1], [], []>} : vector<16x24xf32>, vector<24x32xf32>, vector<16x32xf32> -> vector<16x32xf32>
    %48 = arith.addf %43, %47 : vector<16x32xf32>
    %49 = vector.extract_strided_slice %29 {offsets = [8, 0], sizes = [16, 24], strides = [1, 1]} : vector<24x24xf32> to vector<16x24xf32>
    %c4_35 = arith.constant 4 : index
    %c0_36 = arith.constant 0 : index
    %c0_37 = arith.constant 0 : index
    %50 = vector.load %arg3[%c4_35, %c0_36, %c0_37] : memref<5x24x32xf32, #tpu.memory_space<vmem>>, vector<1x24x32xf32>
    %51 = vector.shape_cast %50 : vector<1x24x32xf32> to vector<24x32xf32>
    %cst_38 = arith.constant dense<0.000000e+00> : vector<16x32xf32>
    %52 = tpu.matmul %49, %51, %cst_38 {dimension_numbers = #tpu.dot_dimension_numbers<[1], [0], [0], [1], [0, 0, 1, 1], [], []>} : vector<16x24xf32>, vector<24x32xf32>, vector<16x32xf32> -> vector<16x32xf32>
    %53 = arith.addf %48, %52 : vector<16x32xf32>
    %c0_39 = arith.constant 0 : index
    %c0_40 = arith.constant 0 : index
    %54 = vector.load %arg4[%c0_39, %c0_40] : memref<1x32xf32, #tpu.memory_space<vmem>>, vector<1x32xf32>
    %55 = vector.broadcast %54 : vector<1x32xf32> to vector<16x32xf32>
    %56 = arith.addf %53, %55 : vector<16x32xf32>
    %cst_41 = arith.constant 0.000000e+00 : f32
    %57 = vector.broadcast %cst_41 : f32 to vector<16x32xf32>
    %58 = arith.maximumf %56, %57 : vector<16x32xf32>
    %59 = vector.extract_strided_slice %58 {offsets = [0, 0], sizes = [8, 32], strides = [1, 1]} : vector<16x32xf32> to vector<8x32xf32>
    %c0_42 = arith.constant 0 : index
    %c0_43 = arith.constant 0 : index
    %c0_44 = arith.constant 0 : index
    %60 = vector.load %arg5[%c0_42, %c0_43, %c0_44] : memref<5x32x32xf32, #tpu.memory_space<vmem>>, vector<1x32x32xf32>
    %61 = vector.shape_cast %60 : vector<1x32x32xf32> to vector<32x32xf32>
    %cst_45 = arith.constant dense<0.000000e+00> : vector<8x32xf32>
    %62 = tpu.matmul %59, %61, %cst_45 {dimension_numbers = #tpu.dot_dimension_numbers<[1], [0], [0], [1], [0, 0, 1, 1], [], []>} : vector<8x32xf32>, vector<32x32xf32>, vector<8x32xf32> -> vector<8x32xf32>
    %63 = vector.extract_strided_slice %58 {offsets = [2, 0], sizes = [8, 32], strides = [1, 1]} : vector<16x32xf32> to vector<8x32xf32>
    %c1_46 = arith.constant 1 : index
    %c0_47 = arith.constant 0 : index
    %c0_48 = arith.constant 0 : index
    %64 = vector.load %arg5[%c1_46, %c0_47, %c0_48] : memref<5x32x32xf32, #tpu.memory_space<vmem>>, vector<1x32x32xf32>
    %65 = vector.shape_cast %64 : vector<1x32x32xf32> to vector<32x32xf32>
    %cst_49 = arith.constant dense<0.000000e+00> : vector<8x32xf32>
    %66 = tpu.matmul %63, %65, %cst_49 {dimension_numbers = #tpu.dot_dimension_numbers<[1], [0], [0], [1], [0, 0, 1, 1], [], []>} : vector<8x32xf32>, vector<32x32xf32>, vector<8x32xf32> -> vector<8x32xf32>
    %67 = arith.addf %62, %66 : vector<8x32xf32>
    %68 = vector.extract_strided_slice %58 {offsets = [4, 0], sizes = [8, 32], strides = [1, 1]} : vector<16x32xf32> to vector<8x32xf32>
    %c2_50 = arith.constant 2 : index
    %c0_51 = arith.constant 0 : index
    %c0_52 = arith.constant 0 : index
    %69 = vector.load %arg5[%c2_50, %c0_51, %c0_52] : memref<5x32x32xf32, #tpu.memory_space<vmem>>, vector<1x32x32xf32>
    %70 = vector.shape_cast %69 : vector<1x32x32xf32> to vector<32x32xf32>
    %cst_53 = arith.constant dense<0.000000e+00> : vector<8x32xf32>
    %71 = tpu.matmul %68, %70, %cst_53 {dimension_numbers = #tpu.dot_dimension_numbers<[1], [0], [0], [1], [0, 0, 1, 1], [], []>} : vector<8x32xf32>, vector<32x32xf32>, vector<8x32xf32> -> vector<8x32xf32>
    %72 = arith.addf %67, %71 : vector<8x32xf32>
    %73 = vector.extract_strided_slice %58 {offsets = [6, 0], sizes = [8, 32], strides = [1, 1]} : vector<16x32xf32> to vector<8x32xf32>
    %c3_54 = arith.constant 3 : index
    %c0_55 = arith.constant 0 : index
    %c0_56 = arith.constant 0 : index
    %74 = vector.load %arg5[%c3_54, %c0_55, %c0_56] : memref<5x32x32xf32, #tpu.memory_space<vmem>>, vector<1x32x32xf32>
    %75 = vector.shape_cast %74 : vector<1x32x32xf32> to vector<32x32xf32>
    %cst_57 = arith.constant dense<0.000000e+00> : vector<8x32xf32>
    %76 = tpu.matmul %73, %75, %cst_57 {dimension_numbers = #tpu.dot_dimension_numbers<[1], [0], [0], [1], [0, 0, 1, 1], [], []>} : vector<8x32xf32>, vector<32x32xf32>, vector<8x32xf32> -> vector<8x32xf32>
    %77 = arith.addf %72, %76 : vector<8x32xf32>
    %78 = vector.extract_strided_slice %58 {offsets = [8, 0], sizes = [8, 32], strides = [1, 1]} : vector<16x32xf32> to vector<8x32xf32>
    %c4_58 = arith.constant 4 : index
    %c0_59 = arith.constant 0 : index
    %c0_60 = arith.constant 0 : index
    %79 = vector.load %arg5[%c4_58, %c0_59, %c0_60] : memref<5x32x32xf32, #tpu.memory_space<vmem>>, vector<1x32x32xf32>
    %80 = vector.shape_cast %79 : vector<1x32x32xf32> to vector<32x32xf32>
    %cst_61 = arith.constant dense<0.000000e+00> : vector<8x32xf32>
    %81 = tpu.matmul %78, %80, %cst_61 {dimension_numbers = #tpu.dot_dimension_numbers<[1], [0], [0], [1], [0, 0, 1, 1], [], []>} : vector<8x32xf32>, vector<32x32xf32>, vector<8x32xf32> -> vector<8x32xf32>
    %82 = arith.addf %77, %81 : vector<8x32xf32>
    %c0_62 = arith.constant 0 : index
    %c0_63 = arith.constant 0 : index
    %83 = vector.load %arg6[%c0_62, %c0_63] : memref<1x32xf32, #tpu.memory_space<vmem>>, vector<1x32xf32>
    %84 = vector.broadcast %83 : vector<1x32xf32> to vector<8x32xf32>
    %85 = arith.addf %82, %84 : vector<8x32xf32>
    %cst_64 = arith.constant 0.000000e+00 : f32
    %86 = vector.broadcast %cst_64 : f32 to vector<8x32xf32>
    %87 = arith.maximumf %85, %86 : vector<8x32xf32>
    %c0_65 = arith.constant 0 : index
    %c0_66 = arith.constant 0 : index
    %88 = vector.load %arg8[%c0_65, %c0_66] : memref<1x128xf32, #tpu.memory_space<vmem>>, vector<1x128xf32>
    %89 = vector.extract_strided_slice %87 {offsets = [0, 0], sizes = [2, 32], strides = [1, 1]} : vector<8x32xf32> to vector<2x32xf32>
    %c0_67 = arith.constant 0 : index
    %c0_68 = arith.constant 0 : index
    %90 = vector.load %arg7[%c0_67, %c0_68] : memref<128x128xf32, #tpu.memory_space<vmem>>, vector<32x128xf32>
    %cst_69 = arith.constant dense<0.000000e+00> : vector<2x128xf32>
    %91 = tpu.matmul %89, %90, %cst_69 {dimension_numbers = #tpu.dot_dimension_numbers<[1], [0], [0], [1], [0, 0, 1, 1], [], []>} : vector<2x32xf32>, vector<32x128xf32>, vector<2x128xf32> -> vector<2x128xf32>
    %92 = vector.broadcast %88 : vector<1x128xf32> to vector<2x128xf32>
    %93 = arith.addf %92, %91 : vector<2x128xf32>
    %94 = vector.extract_strided_slice %87 {offsets = [2, 0], sizes = [2, 32], strides = [1, 1]} : vector<8x32xf32> to vector<2x32xf32>
    %c32 = arith.constant 32 : index
    %c0_70 = arith.constant 0 : index
    %95 = vector.load %arg7[%c32, %c0_70] : memref<128x128xf32, #tpu.memory_space<vmem>>, vector<32x128xf32>
    %cst_71 = arith.constant dense<0.000000e+00> : vector<2x128xf32>
    %96 = tpu.matmul %94, %95, %cst_71 {dimension_numbers = #tpu.dot_dimension_numbers<[1], [0], [0], [1], [0, 0, 1, 1], [], []>} : vector<2x32xf32>, vector<32x128xf32>, vector<2x128xf32> -> vector<2x128xf32>
    %97 = arith.addf %93, %96 : vector<2x128xf32>
    %98 = vector.extract_strided_slice %87 {offsets = [4, 0], sizes = [2, 32], strides = [1, 1]} : vector<8x32xf32> to vector<2x32xf32>
    %c64 = arith.constant 64 : index
    %c0_72 = arith.constant 0 : index
    %99 = vector.load %arg7[%c64, %c0_72] : memref<128x128xf32, #tpu.memory_space<vmem>>, vector<32x128xf32>
    %cst_73 = arith.constant dense<0.000000e+00> : vector<2x128xf32>
    %100 = tpu.matmul %98, %99, %cst_73 {dimension_numbers = #tpu.dot_dimension_numbers<[1], [0], [0], [1], [0, 0, 1, 1], [], []>} : vector<2x32xf32>, vector<32x128xf32>, vector<2x128xf32> -> vector<2x128xf32>
    %101 = arith.addf %97, %100 : vector<2x128xf32>
    %102 = vector.extract_strided_slice %87 {offsets = [6, 0], sizes = [2, 32], strides = [1, 1]} : vector<8x32xf32> to vector<2x32xf32>
    %c96 = arith.constant 96 : index
    %c0_74 = arith.constant 0 : index
    %103 = vector.load %arg7[%c96, %c0_74] : memref<128x128xf32, #tpu.memory_space<vmem>>, vector<32x128xf32>
    %cst_75 = arith.constant dense<0.000000e+00> : vector<2x128xf32>
    %104 = tpu.matmul %102, %103, %cst_75 {dimension_numbers = #tpu.dot_dimension_numbers<[1], [0], [0], [1], [0, 0, 1, 1], [], []>} : vector<2x32xf32>, vector<32x128xf32>, vector<2x128xf32> -> vector<2x128xf32>
    %105 = arith.addf %101, %104 : vector<2x128xf32>
    %106 = tpu.iota {dimensions = array<i32: 1>} : vector<2x128xi32>
    %c0_76 = arith.constant 0 : index
    %c0_77 = arith.constant 0 : index
    %107 = vector.load %arg9[%c0_76, %c0_77] : memref<1x128xf32, #tpu.memory_space<vmem>>, vector<1x128xf32>
    %108 = vector.broadcast %107 : vector<1x128xf32> to vector<2x128xf32>
    %109 = arith.mulf %105, %108 : vector<2x128xf32>
    %110 = vector.extract_strided_slice %109 {offsets = [0, 0], sizes = [2, 32], strides = [1, 1]} : vector<2x128xf32> to vector<2x32xf32>
    %111 = vector.shape_cast %110 : vector<2x32xf32> to vector<2x32x1xf32>
    %112 = vector.shape_cast %109 : vector<2x128xf32> to vector<2x1x128xf32>
    %113 = tpu.iota {dimensions = array<i32: 1>} : vector<2x32x1xi32>
    %114 = tpu.iota {dimensions = array<i32: 2>} : vector<2x1x128xi32>
    %115 = vector.broadcast %111 : vector<2x32x1xf32> to vector<2x32x128xf32>
    %116 = vector.broadcast %112 : vector<2x1x128xf32> to vector<2x32x128xf32>
    %117 = arith.cmpf ogt, %115, %116 : vector<2x32x128xf32>
    %118 = vector.broadcast %111 : vector<2x32x1xf32> to vector<2x32x128xf32>
    %119 = vector.broadcast %112 : vector<2x1x128xf32> to vector<2x32x128xf32>
    %120 = arith.cmpf oeq, %118, %119 : vector<2x32x128xf32>
    %121 = vector.broadcast %113 : vector<2x32x1xi32> to vector<2x32x128xi32>
    %122 = vector.broadcast %114 : vector<2x1x128xi32> to vector<2x32x128xi32>
    %123 = arith.cmpi slt, %121, %122 : vector<2x32x128xi32>
    %124 = arith.andi %120, %123 : vector<2x32x128xi1>
    %125 = arith.ori %117, %124 : vector<2x32x128xi1>
    %126 = arith.extui %125 : vector<2x32x128xi1> to vector<2x32x128xi32>
    %127 = arith.sitofp %126 : vector<2x32x128xi32> to vector<2x32x128xf32>
    %cst_78 = arith.constant dense<0.000000e+00> : vector<2x128xf32>
    %128 = vector.multi_reduction <add>, %127, %cst_78 [1] : vector<2x32x128xf32> to vector<2x128xf32>
    %cst_79 = arith.constant 8.000000e+00 : f32
    %129 = vector.broadcast %cst_79 : f32 to vector<2x128xf32>
    %130 = arith.cmpf olt, %128, %129 : vector<2x128xf32>
    %c32_i32 = arith.constant 32 : i32
    %131 = vector.broadcast %c32_i32 : i32 to vector<2x128xi32>
    %132 = arith.cmpi slt, %106, %131 : vector<2x128xi32>
    %133 = arith.andi %130, %132 : vector<2x128xi1>
    %cst_80 = arith.constant 1.000000e+00 : f32
    %cst_81 = arith.constant 0.000000e+00 : f32
    %134 = vector.broadcast %cst_80 : f32 to vector<2x128xf32>
    %135 = vector.broadcast %cst_81 : f32 to vector<2x128xf32>
    %136 = arith.select %133, %134, %135 : vector<2x128xi1>, vector<2x128xf32>
    %c0_82 = arith.constant 0 : index
    %c0_83 = arith.constant 0 : index
    %137 = vector.load %arg10[%c0_82, %c0_83] : memref<2x128xf32, #tpu.memory_space<vmem>>, vector<2x128xf32>
    tpu.vector_store %arg10[%c0_82, %c0_83], %136 {strides = array<i32>} : memref<2x128xf32, #tpu.memory_space<vmem>>, vector<2x128xf32>,
    return
  }
}

</mosaic_0001>

<bundles_post_ra>
// kernel: autoencoder_forward.1
= control target key start
LH: loop header
LB: loop body
LE: loop exit
PB: predicated region body
PF: predicated region fallthrough
CT: control target
= control target key end

     0   :  { %15 = vsyncpa [#allocation3], 0  ;;  %s2755_s0 = inlined_call_operand.vmem [shape: f32[32,16], index: 0, kind: input, shape index: {}]   ;;  %s2756_s1 = inlined_call_operand.hbm [shape: f32[5,16,24], index: 1, kind: input, shape index: {}]   ;;  %s2757_s2 = inlined_call_operand.vmem [shape: f32[1,24], index: 2, kind: input, shape index: {}]   ;;  %s2758_s3 = inlined_call_operand.hbm [shape: f32[5,24,32], index: 3, kind: input, shape index: {}]   ;;  %s2759_s4 = inlined_call_operand.vmem [shape: f32[1,32], index: 4, kind: input, shape index: {}]   ;;  %s2760_s5 = inlined_call_operand.hbm [shape: f32[5,32,32], index: 5, kind: input, shape index: {}]   ;;  %s2761_s6 = inlined_call_operand.vmem [shape: f32[1,32], index: 6, kind: input, shape index: {}]   ;;  %s2762_s7 = inlined_call_operand.hbm [shape: f32[128,128], index: 7, kind: input, shape index: {}]   ;;  %s2763_s8 = inlined_call_operand.vmem [shape: f32[1,128], index: 8, kind: input, shape index: {}]   ;;  %s2764_s9 = inlined_call_operand.vmem [shape: f32[1,128], index: 9, kind: input, shape index: {}]   ;;  %s2765_s10 = inlined_call_operand.hbm [shape: f32[2,128], index: 10, kind: output, shape index: {}]  }
   0x1   :  { %16 = vsyncpa [#allocation6], 0 }
   0x2   :  { %17 = vsyncpa [#allocation9], 0 }
   0x3   :  { %18 = vsyncpa [#allocation4], 0  ;;  %s2417_s13 = smov [#allocation5]   ;;  %s2418_s15 = smov [#allocation2]  }
   0x4   :  { %s40_s14 = sshll.u32 %s2417_s13, 4  ;;  %s26_s16 = sshll.u32 %s2418_s15, 4  ;;  %s41_s14 = int_to_ptr.vmem [resolvable:$true] %s40_s14  ;;  %s27_s16 = int_to_ptr.vmem [resolvable:$true] %s26_s16 }
   0x5   :  { %s2317_s17 = scalar_lea.vmem %s41_s14, 1920  ;;  %p2322_p1 = scmp.lt.s32.totalorder %s41_s14, %s41_s14 }
   0x6   :  { %p2318_p0 = scmp.ne.s32.totalorder %s41_s14, %s2317_s17  ;;  %p2323_p2 = scmp.lt.s32.totalorder %s2317_s17, %s2317_s17 }
   0x8   :  { %p2324_p3 = por %p2323_p2, %p2322_p1 }
   0xa   :  { %p2325_p4 = pnand %p2324_p3, %p2318_p0 }
   0xc   :  { %2328 = shalt.err (!%p2325_p4)
}
   0xd   :  { %s2419_s18 = smov 128   ;;  %s2420_s19 = smov 8  }
   0xe   :  { %46 = dma.hbm_to_vmem [thread:$0]  %s2758_s3, 1920, %s41_s14, [#allocation6], %s2419_s18, %s2419_s18, %s2420_s19  }
   0xf   :  { %s2337_s22 = scalar_lea.vmem %s27_s16, 1280  ;;  %p2342_p6 = scmp.lt.s32.totalorder %s27_s16, %s27_s16 }
  0x10   :  { %p2338_p5 = scmp.ne.s32.totalorder %s27_s16, %s2337_s22  ;;  %p2343_p7 = scmp.lt.s32.totalorder %s2337_s22, %s2337_s22 }
  0x12   :  { %p2344_p8 = por %p2343_p7, %p2342_p6 }
  0x14   :  { %p2345_p9 = pnand %p2344_p8, %p2338_p5 }
  0x16   :  { %2348 = shalt.err (!%p2345_p9)
}
  0x17   :  { %32 = dma.hbm_to_vmem [thread:$0]  %s2756_s1, 1280, %s27_s16, [#allocation3], %s2419_s18, %s2419_s18, %s2420_s19  }
  0x18   :  { %s2421_s25 = smov [#allocation7]   ;;  %s2422_s27 = smov [#allocation8]  }
  0x19   :  { %s54_s26 = sshll.u32 %s2421_s25, 4  ;;  %s68_s28 = sshll.u32 %s2422_s27, 4  ;;  %s55_s26 = int_to_ptr.vmem [resolvable:$true] %s54_s26  ;;  %s69_s28 = int_to_ptr.vmem [resolvable:$true] %s68_s28 }
  0x1a   :  { %s2357_s3 = scalar_lea.vmem %s55_s26, 2560  ;;  %p2362_p11 = scmp.lt.s32.totalorder %s55_s26, %s55_s26 }
  0x1b   :  { %p2358_p10 = scmp.ne.s32.totalorder %s55_s26, %s2357_s3  ;;  %p2363_p12 = scmp.lt.s32.totalorder %s2357_s3, %s2357_s3 }
  0x1d   :  { %p2364_p13 = por %p2363_p12, %p2362_p11 }
  0x1f   :  { %p2365_p0 = pnand %p2364_p13, %p2358_p10 }
  0x21   :  { %2368 = shalt.err (!%p2365_p0)
}
  0x22   :  { %60 = dma.hbm_to_vmem [thread:$0]  %s2760_s5, 2560, %s55_s26, [#allocation6], %s2419_s18, %s2419_s18, %s2420_s19  }
  0x23   :  { %s2377_s1 = scalar_lea.vmem %s69_s28, 2048  ;;  %p2382_p2 = scmp.lt.s32.totalorder %s69_s28, %s69_s28 }
  0x24   :  { %p2378_p1 = scmp.ne.s32.totalorder %s69_s28, %s2377_s1  ;;  %p2383_p3 = scmp.lt.s32.totalorder %s2377_s1, %s2377_s1 }
  0x26   :  { %p2384_p4 = por %p2383_p3, %p2382_p2 }
  0x28   :  { %p2385_p5 = pnand %p2384_p4, %p2378_p1 }
  0x2a   :  { %2388 = shalt.err (!%p2385_p5)
}
  0x2b   :  { %74 = dma.hbm_to_vmem [thread:$0]  %s2762_s7, 2048, %s69_s28, [#allocation9], %s2419_s18, %s2419_s18, %s2420_s19  }
  0x2c   :  { %2409 = dma.done.wait [#allocation3], 1280  }
  0x2d   :  { %2410 = vsyncadd [#allocation3], 4294966016 }
  0x2e   :  { %2411 = dma.done.wait [#allocation6], 4480  }
  0x2f   :  { %2412 = vsyncadd [#allocation6], 4294962816 }
  0x30   :  { %2413 = dma.done.wait [#allocation9], 2048  }
  0x31   :  { %2414 = vsyncadd [#allocation9], 4294965248  ;;  %v2423_v0 = vmov 0.0   ;;  %vm2424_vm0 = vmmov 0   ;;  %v99_v1 = vld [vmem:[#allocation2 + $0x18] sm:$0xff]  ;;  %v96_v2 = vld [vmem:[#allocation2 + $0x8] sm:$0xff] }
  0x32   :  { %2090 = vmatprep.subr.mxu0 %v2423_v0  ;;  %2103 = vmatprep.subr.mxu1 %v2423_v0  ;;  %v98_v3 = vld [vmem:[#allocation2 + $0x10] sm:$0xff]  ;;  %v91_v4 = vld [vmem:[%s2755_s0] sm:$0xff]  ;;  %v2518_v5 = vld [vmem:[%s2755_s0 + $0x8] sm:$0xff]  ;;  %vm104_vm1 = vcmask 1045504   ;;  %vm112_vm2 = vcmask 130048   ;;  %vm388_vm3 = vcmask 1041408  }
  0x33   :  { %2094 = vmatprep.mubr.msk.f32.mxu0 %vm2424_vm0, %v2423_v0  ;;  %2107 = vmatprep.mubr.msk.f32.mxu1 %vm2424_vm0, %v2423_v0  ;;  %v95_v6 = vld [vmem:[#allocation2] sm:$0xff]  ;;  %v105_v7 = vrot.slane %v91_v4, 2  ;;  %v106_v8 = vrot.slane %v2518_v5, 2  ;;  %v2526_v9 = vld [vmem:[%s2755_s0 + $0x10] sm:$0xff]  ;;  %v287_v10 = vld [vmem:[#allocation2 + $0x28] sm:$0xff]  ;;  %v389_v18 = vrot.slane %v91_v4, 6 }
  0x34   :  { %2091 = vmatpush3.msra.mxu0 %v99_v1  ;;  %2104 = vmatpush3.msra.mxu1 %v96_v2  ;;  %v108_v11 = vrot.slane %v2526_v9, 2  ;;  %v2532_v12 = vld [vmem:[%s2755_s0 + $0x18] sm:$0xff]  ;;  %v286_v14 = vld [vmem:[#allocation2 + $0x20] sm:$0xff]  ;;  %v390_v19 = vrot.slane %v2518_v5, 6  ;;  %v289_v21 = vrot.slane %v91_v4, 4  ;;  %v290_v22 = vrot.slane %v2518_v5, 4 }
  0x35   :  { %2092 = vmatprep.subr.mxu0 %v2423_v0  ;;  %2105 = vmatprep.subr.mxu1 %v2423_v0  ;;  %v107_v13 = vsel %vm104_vm1, %v105_v7, %v106_v8  ;;  %v110_v16 = vrot.slane %v2532_v12, 2  ;;  %v387_v17 = vld [vmem:[#allocation2 + $0x38] sm:$0xff]  ;;  %v386_v23 = vld [vmem:[#allocation2 + $0x30] sm:$0xff]  ;;  %vm288_vm4 = vcmask 1043456   ;;  %v392_v25 = vrot.slane %v2526_v9, 6  ;;  %v487_v28 = vld [vmem:[#allocation2 + $0x48] sm:$0xff] }
  0x36   :  { %2093 = vmatpush3.msra.mxu0 %v98_v3  ;;  %2106 = vmatpush3.msra.mxu1 %v95_v6  ;;  %v109_v15 = vsel %vm104_vm1, %v106_v8, %v108_v11  ;;  %v391_v24 = vsel %vm388_vm3, %v389_v18, %v390_v19  ;;  %v291_v26 = vsel %vm288_vm4, %v289_v21, %v290_v22  ;;  %v292_v27 = vrot.slane %v2526_v9, 4  ;;  %v486_v30 = vld [vmem:[#allocation2 + $0x40] sm:$0xff]  ;;  %v592_v36 = vld [vmem:[#allocation5 + $0x28] sm:$0xff]  ;;  %v763_v37 = vld [vmem:[#allocation5 + $0x40] sm:$0xff] }
  0x37   :  { %2116 = vmatprep.subr.mxu0 %v2423_v0  ;;  %2108 = vmatmul.mubr.msk.f32.vlgmr.msra.gmra.mxu1 %vm112_vm2, %v91_v4  ;;  %v111_v20 = vsel %vm104_vm1, %v108_v11, %v110_v16  ;;  %v393_v29 = vsel %vm388_vm3, %v390_v19, %v392_v25  ;;  %v394_v31 = vrot.slane %v2532_v12, 6  ;;  %v294_v33 = vrot.slane %v2532_v12, 4  ;;  %v591_v38 = vld [vmem:[#allocation5 + $0x20] sm:$0xff]  ;;  %v762_v39 = vld [vmem:[#allocation5 + $0x38] sm:$0xff]  ;;  %v761_v41 = vld [vmem:[#allocation5 + $0x30] sm:$0xff] }
  0x38   :  { %2095 = vmatmul.mubr.msk.f32.vlgmr.msra.gmra.mxu0 %vm112_vm2, %v107_v13  ;;  %2110 = vmatprep.mubr.msk.f32.mxu1 %vm2424_vm0, %v2423_v0  ;;  %v293_v32 = vsel %vm288_vm4, %v290_v22, %v292_v27  ;;  %v590_v40 = vld [vmem:[#allocation5 + $0x18] sm:$0xff]  ;;  %v2602_v42 = vld [vmem:[#allocation5 + $0x10] sm:$0xff]  ;;  %vm601_vm5 = vcmask 195584   ;;  %vm1048_vm6 = vcmask 261120  }
  0x39   :  { %2117 = vmatpush3.msra.mxu0 %v287_v10  ;;  %2097 = vmatprep.mubr.msk.f32.mxu0 %vm2424_vm0, %v2423_v0  ;;  %v395_v34 = vsel %vm388_vm3, %v392_v25, %v394_v31  ;;  %v295_v35 = vsel %vm288_vm4, %v292_v27, %v294_v33  ;;  %v2604_v43 = vld [vmem:[#allocation5 + $0x70] sm:$0xff] }
  0x3a   :  { %2118 = vmatprep.subr.mxu0 %v2423_v0  ;;  %2129 = vmatprep.subr.mxu1 %v2423_v0  ;;  %v1963_v11 = vld [vmem:[%s2757_s2] ss:$0 sm:$0xff] }
  0x3b   :  { %2111 = vmatmul.mubr.msk.f32.gmra.mxu1 %vm112_vm2, %v2518_v5  ;;  %2119 = vmatpush3.msra.mxu0 %v286_v14 }
  0x3c   :  { %2098 = vmatmul.mubr.msk.f32.gmra.mxu0 %vm112_vm2, %v109_v15  ;;  %2113 = vmatprep.mubr.msk.f32.mxu1 %vm2424_vm0, %v2423_v0 }
  0x3d   :  { %2100 = vmatprep.mubr.msk.f32.mxu0 %vm2424_vm0, %v2423_v0  ;;  %2130 = vmatpush3.msra.mxu1 %v387_v17 }
  0x3e   :  { %2131 = vmatprep.subr.mxu1 %v2423_v0  ;;  %2142 = vmatprep.subr.mxu0 %v2423_v0 }
  0x3f   :  { %2114 = vmatmul.mubr.msk.f32.gmra.mxu1 %vm112_vm2, %v2526_v9 }
  0x40   :  { %2101 = vmatmul.mubr.msk.f32.gmra.mxu0 %vm112_vm2, %v111_v20  ;;  %2132 = vmatpush3.msra.mxu1 %v386_v23 }
  0x41   :  { %2120 = vmatprep.mubr.msk.f32.mxu0 %vm2424_vm0, %v2423_v0  ;;  %2133 = vmatprep.mubr.msk.f32.mxu1 %vm2424_vm0, %v2423_v0 }
  0x42   :  { %2155 = vmatprep.subr.mxu1 %v592_v36 }
  0x43   :  { %2134 = vmatmul.mubr.msk.f32.vlgmr.msra.gmra.mxu1 %vm112_vm2, %v391_v24 }
  0x44   :  { %2121 = vmatmul.mubr.msk.f32.vlgmr.msra.gmra.mxu0 %vm112_vm2, %v291_v26  ;;  %2136 = vmatprep.mubr.msk.f32.mxu1 %vm2424_vm0, %v2423_v0 }
  0x45   :  { %2143 = vmatpush3.msra.mxu0 %v487_v28  ;;  %2123 = vmatprep.mubr.msk.f32.mxu0 %vm2424_vm0, %v2423_v0 }
  0x46   :  { %2144 = vmatprep.subr.mxu0 %v2423_v0  ;;  %2156 = vmatpush3.msra.mxu1 %v592_v36 }
  0x47   :  { %2137 = vmatmul.mubr.msk.f32.gmra.mxu1 %vm112_vm2, %v393_v29  ;;  %2145 = vmatpush3.msra.mxu0 %v486_v30 }
  0x48   :  { %2124 = vmatmul.mubr.msk.f32.gmra.mxu0 %vm112_vm2, %v293_v32  ;;  %2139 = vmatprep.mubr.msk.f32.mxu1 %vm2424_vm0, %v2423_v0 }
  0x49   :  { %2126 = vmatprep.mubr.msk.f32.mxu0 %vm2424_vm0, %v2423_v0  ;;  %2173 = vmatprep.subr.mxu0 %v763_v37 }
  0x4a   :  { %2157 = vmatprep.subr.mxu1 %v591_v38 }
  0x4b   :  { %2140 = vmatmul.mubr.msk.f32.gmra.mxu1 %vm112_vm2, %v395_v34 }
  0x4c   :  { %2127 = vmatmul.mubr.msk.f32.gmra.mxu0 %vm112_vm2, %v295_v35  ;;  %2158 = vmatpush3.msra.mxu1 %v591_v38 }
  0x4d   :  { %2146 = vmatprep.mubr.msk.f32.mxu0 %vm2424_vm0, %v2423_v0  ;;  %2159 = vmatprep.subr.mxu1 %v590_v40 }
  0x4e   :  { %2160 = vmatpush3.msra.mxu1 %v590_v40  ;;  %v587_v40 = vld [vmem:[#allocation5 + $0x8] sm:$0xff] }
  0x4f   :  { %2164 = vmatprep.subr.mxu1 %v2602_v42 }
  0x50   :  { %2147 = vmatmul.mubr.msk.f32.vlgmr.msra.gmra.mxu0 %vm112_vm2, %v2518_v5 }
  0x51   :  { %2149 = vmatprep.mubr.msk.f32.mxu0 %vm2424_vm0, %v2423_v0  ;;  %2174 = vmatpush3.msra.mxu0 %v763_v37 }
  0x52   :  { %2175 = vmatprep.subr.mxu0 %v762_v39 }
  0x53   :  { %2176 = vmatpush3.msra.mxu0 %v762_v39 }
  0x54   :  { %2150 = vmatmul.mubr.msk.f32.gmra.mxu0 %vm112_vm2, %v2526_v9  ;;  %2177 = vmatprep.subr.mxu0 %v761_v41 }
  0x55   :  { %2152 = vmatprep.mubr.msk.f32.mxu0 %vm2424_vm0, %v2423_v0  ;;  %2178 = vmatpush3.msra.mxu0 %v761_v41  ;;  %v942_v41 = vld [vmem:[#allocation5 + $0x68] sm:$0xff] }
  0x56   :  { %2191 = vmatprep.subr.mxu0 %v2604_v43 }
  0x58   :  { %2153 = vmatmul.mubr.msk.f32.gmra.mxu0 %vm112_vm2, %v2532_v12 }
  0xf7   :  { %v271_v44 = vpop.f32.mrf.mxu1 }
  0xf8   :  { %v185_v45 = vpop.f32.mrf.mxu0 }
  0xf9   :  { %v2109_v46 = vpop.f32.mrf.mxu1  ;;  %v272_v62 = vadd.f32 %v271_v44, %v185_v45  ;;  %v586_v44 = vld [vmem:[#allocation5] sm:$0xff] }
  0xfa   :  { %v2096_v47 = vpop.f32.mrf.mxu0  ;;  %v941_v45 = vld [vmem:[#allocation5 + $0x60] sm:$0xff]  ;;  %v853_v46 = vld [vmem:[#allocation5 + $0x58] sm:$0xff] }
  0xfb   :  { %v276_v48 = vpop.f32.mrf.mxu1 }
  0xfc   :  { %v190_v49 = vpop.f32.mrf.mxu0 }
  0xfd   :  { %v2112_v50 = vpop.f32.mrf.mxu1  ;;  %v277_v5 = vadd.f32 %v276_v48, %v190_v49  ;;  %v851_v49 = vld [vmem:[#allocation5 + $0x48] sm:$0xff] }
  0xfe   :  { %v2099_v51 = vpop.f32.mrf.mxu0 }
  0xff   :  { %v281_v52 = vpop.f32.mrf.mxu1 }
 0x100   :  { %v195_v53 = vpop.f32.mrf.mxu0 }
 0x101   :  { %v2115_v54 = vpop.f32.mrf.mxu1  ;;  %v282_v12 = vadd.f32 %v281_v52, %v195_v53  ;;  %v1037_v52 = vld [vmem:[#allocation7 + $0x18] sm:$0xff]  ;;  %v1036_v53 = vld [vmem:[#allocation7 + $0x10] sm:$0xff] }
 0x102   :  { %v2102_v55 = vpop.f32.mrf.mxu0  ;;  %v1042_v54 = vld [vmem:[#allocation7 + $0x38] sm:$0xff] }
 0x103   :  { %v468_v56 = vpop.f32.mrf.mxu1  ;;  %v1035_v55 = vld [vmem:[#allocation7 + $0x8] sm:$0xff] }
 0x104   :  { %v368_v57 = vpop.f32.mrf.mxu0 }
 0x105   :  { %v2135_v58 = vpop.f32.mrf.mxu1  ;;  %v382_v2 = vadd.f32 %v368_v57, %v272_v62  ;;  %v1034_v57 = vld [vmem:[#allocation7] sm:$0xff] }
 0x106   :  { %v2122_v59 = vpop.f32.mrf.mxu0  ;;  %v1040_v58 = vld [vmem:[#allocation7 + $0x28] sm:$0xff] }
 0x107   :  { %v473_v60 = vpop.f32.mrf.mxu1  ;;  %v482_v8 = vadd.f32 %v468_v56, %v382_v2  ;;  %v1041_v56 = vld [vmem:[#allocation7 + $0x30] sm:$0xff]  ;;  %v1039_v59 = vld [vmem:[#allocation7 + $0x20] sm:$0xff] }
 0x108   :  { %v373_v61 = vpop.f32.mrf.mxu0 }
 0x109   :  { %v2138_v63 = vpop.f32.mrf.mxu1  ;;  %v383_v9 = vadd.f32 %v373_v61, %v277_v5 }
 0x10a   :  { %v2125_v1 = vpop.f32.mrf.mxu0 }
 0x10b   :  { %v478_v3 = vpop.f32.mrf.mxu1  ;;  %v483_v15 = vadd.f32 %v473_v60, %v383_v9 }
 0x10c   :  { %v378_v4 = vpop.f32.mrf.mxu0 }
 0x10d   :  { %v2141_v6 = vpop.f32.mrf.mxu1  ;;  %v384_v16 = vadd.f32 %v378_v4, %v282_v12 }
 0x10e   :  { %v2128_v7 = vpop.f32.mrf.mxu0 }
 0x10f   :  { %v484_v22 = vadd.f32 %v478_v3, %v384_v16 }
 0x110   :  { %v556_v10 = vpop.f32.mrf.mxu0 }
 0x111   :  { %v570_v13 = vadd.f32 %v556_v10, %v482_v8  ;;  %v1974_v10 = vld [vmem:[%s2759_s4] ss:$0 sm:$0xff] }
 0x112   :  { %v2148_v14 = vpop.f32.mrf.mxu0 }
 0x113   :  { %v580_v17 = vadd.f32 %v1963_v11, %v570_v13 }
 0x114   :  { %v561_v18 = vpop.f32.mrf.mxu0 }
 0x115   :  { %v571_v19 = vadd.f32 %v561_v18, %v483_v15  ;;  %v583_v20 = vmax.f32 %v580_v17, 0.0 }
 0x116   :  { %v2151_v21 = vpop.f32.mrf.mxu0 }
 0x117   :  { %v581_v23 = vadd.f32 %v1963_v11, %v571_v19  ;;  %v596_v28 = vrot.slane %v583_v20, 2  ;;  %v764_v31 = vrot.slane %v583_v20, 4  ;;  %v854_v48 = vrot.slane %v583_v20, 6  ;;  %v1277_v21 = vld [vmem:[#allocation7 + $0x70] sm:$0xff] }
 0x118   :  { %v566_v24 = vpop.f32.mrf.mxu0 }
 0x119   :  { %v584_v25 = vmax.f32 %v581_v23, 0.0  ;;  %v572_v26 = vadd.f32 %v566_v24, %v484_v22  ;;  %v1197_v24 = vld [vmem:[#allocation7 + $0x58] sm:$0xff] }
 0x11a   :  { %v2154_v27 = vpop.f32.mrf.mxu0 }
 0x11b   :  { %v582_v29 = vadd.f32 %v1963_v11, %v572_v26  ;;  %v597_v30 = vrot.slane %v584_v25, 2  ;;  %v765_v32 = vrot.slane %v584_v25, 4  ;;  %v855_v47 = vrot.slane %v584_v25, 6  ;;  %v1276_v26 = vld [vmem:[#allocation7 + $0x68] sm:$0xff]  ;;  %v1196_v27 = vld [vmem:[#allocation7 + $0x50] sm:$0xff] }
 0x11d   :  { %v585_v33 = vmax.f32 %v582_v29, 0.0  ;;  %v598_v34 = vsel %vm104_vm1, %v596_v28, %v597_v30  ;;  %v766_v35 = vsel %vm288_vm4, %v764_v31, %v765_v32  ;;  %v1275_v29 = vld [vmem:[#allocation7 + $0x60] sm:$0xff] }
 0x11e   :  { %2161 = vmatprep.mubr.msk.f32.mxu1 %vm601_vm5, %v598_v34  ;;  %2179 = vmatprep.mubr.msk.f32.mxu0 %vm601_vm5, %v766_v35  ;;  %v1194_v34 = vld [vmem:[#allocation7 + $0x40] sm:$0xff] }
 0x11f   :  { %v599_v36 = vrot.slane %v585_v33, 2  ;;  %v767_v37 = vrot.slane %v585_v33, 4  ;;  %v857_v50 = vrot.slane %v585_v33, 6 }
 0x121   :  { %v600_v38 = vsel %vm104_vm1, %v597_v30, %v599_v36  ;;  %v768_v39 = vsel %vm288_vm4, %v765_v32, %v767_v37  ;;  %v858_v51 = vsel %vm388_vm3, %v855_v47, %v857_v50  ;;  %v1195_v30 = vld [vmem:[#allocation7 + $0x48] sm:$0xff]  ;;  %v1359_v36 = vld [vmem:[#allocation7 + $0x98] sm:$0xff] }
 0x122   :  { %2162 = vmatmul.mubr.msk.f32.vlgmr.msra.gmra.mxu1 %vm601_vm5, %v600_v38  ;;  %2180 = vmatmul.mubr.msk.f32.vlgmr.msra.gmra.mxu0 %vm601_vm5, %v768_v39  ;;  %v1358_v38 = vld [vmem:[#allocation7 + $0x90] sm:$0xff]  ;;  %v1357_v39 = vld [vmem:[#allocation7 + $0x88] sm:$0xff] }
 0x123   :  { %2165 = vmatpush3.msra.mxu1 %v2602_v42  ;;  %2192 = vmatpush3.msra.mxu0 %v2604_v43  ;;  %v852_v42 = vld [vmem:[#allocation5 + $0x50] sm:$0xff]  ;;  %v856_v43 = vsel %vm388_vm3, %v854_v48, %v855_v47  ;;  %v1529_v47 = vld [vmem:[#allocation8 + $0x30] sm:$0xff]  ;;  %v1443_v48 = vld [vmem:[#allocation8] sm:$0xff] }
 0x124   :  { %2166 = vmatprep.subr.mxu1 %v587_v40  ;;  %2170 = vmatprep.mubr.msk.f32.mxu1 %vm601_vm5, %v583_v20  ;;  %v1278_v20 = vld [vmem:[#allocation7 + $0x78] sm:$0xff] }
 0x125   :  { %2193 = vmatprep.subr.mxu0 %v942_v41  ;;  %2197 = vmatprep.mubr.msk.f32.mxu0 %vm601_vm5, %v584_v25 }
 0x126   :  { %2167 = vmatpush3.msra.mxu1 %v587_v40  ;;  %2194 = vmatpush3.msra.mxu0 %v942_v41  ;;  %v1356_v40 = vld [vmem:[#allocation7 + $0x80] sm:$0xff]  ;;  %v1446_v41 = vld [vmem:[#allocation8 + $0x18] sm:$0xff] }
 0x127   :  { %2168 = vmatprep.subr.mxu1 %v586_v44  ;;  %2195 = vmatprep.subr.mxu0 %v941_v45 }
 0x128   :  { %2169 = vmatpush3.msra.mxu1 %v586_v44  ;;  %2196 = vmatpush3.msra.mxu0 %v941_v45  ;;  %v1445_v44 = vld [vmem:[#allocation8 + $0x10] sm:$0xff]  ;;  %v1530_v45 = vld [vmem:[#allocation8 + $0x38] sm:$0xff] }
 0x129   :  { %2171 = vmatmul.mubr.msk.f32.vlgmr.msra.gmra.mxu1 %vm601_vm5, %v584_v25  ;;  %2182 = vmatprep.subr.mxu1 %v853_v46 }
 0x12a   :  { %2198 = vmatmul.mubr.msk.f32.vlgmr.msra.gmra.mxu0 %vm601_vm5, %v585_v33  ;;  %2183 = vmatpush3.msra.mxu1 %v853_v46  ;;  %v1444_v46 = vld [vmem:[#allocation8 + $0x8] sm:$0xff] }
 0x12b   :  { %2188 = vmatprep.mubr.msk.f32.mxu1 %vm601_vm5, %v856_v43  ;;  %2184 = vmatprep.subr.mxu1 %v852_v42  ;;  %v1527_v43 = vld [vmem:[#allocation8 + $0x20] sm:$0xff] }
 0x12c   :  { %2185 = vmatpush3.msra.mxu1 %v852_v42  ;;  %2211 = vmatprep.subr.mxu0 %v2423_v0  ;;  %v1528_v42 = vld [vmem:[#allocation8 + $0x28] sm:$0xff] }
 0x12d   :  { %2186 = vmatprep.subr.mxu1 %v851_v49  ;;  %2219 = vmatprep.mubr.msk.f32.mxu0 %vm2424_vm0, %v2423_v0 }
 0x12e   :  { %2187 = vmatpush3.msra.mxu1 %v851_v49  ;;  %2212 = vmatpush3.msra.mxu0 %v1037_v52 }
 0x12f   :  { %2189 = vmatmul.mubr.msk.f32.vlgmr.msra.gmra.mxu1 %vm601_vm5, %v858_v51  ;;  %2200 = vmatprep.subr.mxu1 %v2423_v0 }
 0x130   :  { %2208 = vmatprep.mubr.msk.f32.mxu1 %vm2424_vm0, %v2423_v0  ;;  %2213 = vmatprep.subr.mxu0 %v2423_v0 }
 0x131   :  { %2214 = vmatpush3.msra.mxu0 %v1036_v53  ;;  %2201 = vmatpush3.msra.mxu1 %v1042_v54 }
 0x132   :  { %2215 = vmatprep.subr.mxu0 %v2423_v0  ;;  %2202 = vmatprep.subr.mxu1 %v2423_v0 }
 0x133   :  { %2216 = vmatpush3.msra.mxu0 %v1035_v55  ;;  %2203 = vmatpush3.msra.mxu1 %v1041_v56 }
 0x134   :  { %2217 = vmatprep.subr.mxu0 %v2423_v0  ;;  %2204 = vmatprep.subr.mxu1 %v2423_v0 }
 0x135   :  { %2218 = vmatpush3.msra.mxu0 %v1034_v57  ;;  %2205 = vmatpush3.msra.mxu1 %v1040_v58 }
 0x136   :  { %2233 = vmatprep.subr.mxu0 %v2423_v0  ;;  %2206 = vmatprep.subr.mxu1 %v2423_v0 }
 0x137   :  { %2207 = vmatpush3.msra.mxu1 %v1039_v59 }
 0x138   :  { %2222 = vmatprep.subr.mxu1 %v2423_v0 }
 0x1e2   :  { %v2163_v60 = vpop.f32.mrf.mxu1  ;;  %v2181_v62 = vpop.f32.mrf.mxu0 }
 0x1e4   :  { %v672_v61 = vpop.f32.mrf.mxu1  ;;  %v839_v2 = vpop.f32.mrf.mxu0 }
 0x1e9   :  { %v2172_v63 = vpop.f32.mrf.mxu1 }
 0x1ea   :  { %v757_v1 = vadd.f32 %v2172_v63, %v2163_v60  ;;  %v2199_v6 = vpop.f32.mrf.mxu0 }
 0x1eb   :  { %v751_v3 = vpop.f32.mrf.mxu1 }
 0x1ec   :  { %v752_v4 = vadd.f32 %v751_v3, %v672_v61  ;;  %v849_v5 = vadd.f32 %v2181_v62, %v757_v1  ;;  %v1012_v14 = vpop.f32.mrf.mxu0  ;;  %v1980_v61 = vld [vmem:[%s2761_s6] ss:$0 sm:$0xff] }
 0x1ed   :  { %v1608_v3 = vld [vmem:[#allocation8 + $0x58] sm:$0xff] }
 0x1ee   :  { %v848_v9 = vadd.f32 %v839_v2, %v752_v4 }
 0x1ef   :  { %v2190_v7 = vpop.f32.mrf.mxu1 }
 0x1f0   :  { %v939_v8 = vadd.f32 %v2190_v7, %v849_v5  ;;  %v1607_v5 = vld [vmem:[#allocation8 + $0x50] sm:$0xff]  ;;  %v1606_v7 = vld [vmem:[#allocation8 + $0x48] sm:$0xff] }
 0x1f1   :  { %v929_v11 = vpop.f32.mrf.mxu1 }
 0x1f2   :  { %v1022_v12 = vadd.f32 %v2199_v6, %v939_v8  ;;  %v938_v13 = vadd.f32 %v929_v11, %v848_v9  ;;  %v1686_v6 = vld [vmem:[#allocation8 + $0x78] sm:$0xff]  ;;  %v1685_v8 = vld [vmem:[#allocation8 + $0x70] sm:$0xff]  ;;  %v1605_v9 = vld [vmem:[#allocation8 + $0x40] sm:$0xff] }
 0x1f4   :  { %v1031_v15 = vadd.f32 %v1974_v10, %v1022_v12  ;;  %v1021_v16 = vadd.f32 %v1012_v14, %v938_v13  ;;  %v1683_v12 = vld [vmem:[#allocation8 + $0x60] sm:$0xff]  ;;  %v1982_v14 = vld [vmem:[%s2763_s8] ss:$0 sm:$0xff]  ;;  %s2426_s8 = smov [#allocation10]  }
 0x1f6   :  { %v1033_v17 = vmax.f32 %v1031_v15, 0.0  ;;  %v1030_v18 = vadd.f32 %v1974_v10, %v1021_v16  ;;  %v1684_v10 = vld [vmem:[#allocation8 + $0x68] sm:$0xff] }
 0x1f8   :  { %v1032_v19 = vmax.f32 %v1030_v18, 0.0  ;;  %v1046_v23 = vrot.slane %v1033_v17, 2  ;;  %v1280_v31 = vrot.slane %v1033_v17, 6  ;;  %v1199_v35 = vrot.slane %v1033_v17, 4 }
 0x1fa   :  { %2220 = vmatmul.mubr.msk.f32.vlgmr.msra.gmra.mxu0 %vm1048_vm6, %v1032_v19  ;;  %v1045_v22 = vrot.slane %v1032_v19, 2  ;;  %v1279_v28 = vrot.slane %v1032_v19, 6  ;;  %v1198_v32 = vrot.slane %v1032_v19, 4  ;;  %v1761_v19 = vlaneseq }
 0x1fb   :  { %2234 = vmatpush3.msra.mxu0 %v1278_v20  ;;  %2241 = vmatprep.mubr.msk.f32.mxu0 %vm2424_vm0, %v2423_v0  ;;  %v2425_v20 = vmov 1966171168  }
 0x1fc   :  { %2235 = vmatprep.subr.mxu0 %v2423_v0  ;;  %v1047_v25 = vsel %vm104_vm1, %v1045_v22, %v1046_v23  ;;  %v1281_v33 = vsel %vm388_vm3, %v1279_v28, %v1280_v31  ;;  %v1200_v37 = vsel %vm288_vm4, %v1198_v32, %v1199_v35 }
 0x1fd   :  { %2236 = vmatpush3.msra.mxu0 %v1277_v21  ;;  %2209 = vmatmul.mubr.msk.f32.vlgmr.msra.gmra.mxu1 %vm1048_vm6, %v1047_v25  ;;  %v1811_v21 = vunpack.c.l.s4 %v2425_v20 }
 0x1fe   :  { %2223 = vmatpush3.msra.mxu1 %v1197_v24  ;;  %2237 = vmatprep.subr.mxu0 %v2423_v0  ;;  %v1772_v24 = vshrl.u32 %v1761_v19, 7 }
 0x1ff   :  { %2224 = vmatprep.subr.mxu1 %v2423_v0  ;;  %2238 = vmatpush3.msra.mxu0 %v1276_v26  ;;  %v1812_v25 = vunpack.c.0.s8 %v1811_v21 }
 0x200   :  { %2225 = vmatpush3.msra.mxu1 %v1196_v27  ;;  %2239 = vmatprep.subr.mxu0 %v2423_v0  ;;  %v1773_v32 = vsub.s32 0, %v1772_v24 }
 0x201   :  { %2226 = vmatprep.subr.mxu1 %v2423_v0  ;;  %2240 = vmatpush3.msra.mxu0 %v1275_v29 }
 0x202   :  { %2227 = vmatpush3.msra.mxu1 %v1195_v30  ;;  %2242 = vmatmul.mubr.msk.f32.vlgmr.msra.gmra.mxu0 %vm1048_vm6, %v1281_v33  ;;  %v1986_v30 = vld [vmem:[%s2764_s9] ss:$0 sm:$0xff]  ;;  %v1792_v33 = vsub.s32 1, %v1772_v24  ;;  %s1937_s9 = sshll.u32 %s2426_s8, 4  ;;  %s1938_s9 = int_to_ptr.vmem [resolvable:$true] %s1937_s9 }
 0x203   :  { %2228 = vmatprep.subr.mxu1 %v2423_v0  ;;  %2230 = vmatprep.mubr.msk.f32.mxu1 %vm2424_vm0, %v2423_v0  ;;  %s2389_s25 = scalar_lea.vmem %s1938_s9, 32  ;;  %p2394_p7 = scmp.lt.s32.totalorder %s1938_s9, %s1938_s9 }
 0x204   :  { %2229 = vmatpush3.msra.mxu1 %v1194_v34  ;;  %2255 = vmatprep.subr.mxu0 %v2423_v0  ;;  %v1815_v34 = vsub.s32 %v1812_v25, %v1772_v24  ;;  %p2390_p6 = scmp.ne.s32.totalorder %s1938_s9, %s2389_s25  ;;  %p2395_p8 = scmp.lt.s32.totalorder %s2389_s25, %s2389_s25 }
 0x205   :  { %2231 = vmatmul.mubr.msk.f32.vlgmr.msra.gmra.mxu1 %vm1048_vm6, %v1200_v37  ;;  %2244 = vmatprep.subr.mxu1 %v2423_v0 }
 0x206   :  { %2245 = vmatpush3.msra.mxu1 %v1359_v36  ;;  %2252 = vmatprep.mubr.msk.f32.mxu1 %vm2424_vm0, %v2423_v0  ;;  %p2396_p9 = por %p2395_p8, %p2394_p7 }
 0x207   :  { %2246 = vmatprep.subr.mxu1 %v2423_v0  ;;  %2263 = vmatprep.mubr.msk.f32.mxu0 %vm2424_vm0, %v2423_v0 }
 0x208   :  { %2247 = vmatpush3.msra.mxu1 %v1358_v38  ;;  %2256 = vmatpush3.msra.mxu0 %v1446_v41  ;;  %p2397_p10 = pnand %p2396_p9, %p2390_p6 }
 0x209   :  { %2248 = vmatprep.subr.mxu1 %v2423_v0  ;;  %2257 = vmatprep.subr.mxu0 %v2423_v0 }
 0x20a   :  { %2249 = vmatpush3.msra.mxu1 %v1357_v39  ;;  %2258 = vmatpush3.msra.mxu0 %v1445_v44 }
 0x20b   :  { %2250 = vmatprep.subr.mxu1 %v2423_v0  ;;  %2259 = vmatprep.subr.mxu0 %v2423_v0 }
 0x20c   :  { %2251 = vmatpush3.msra.mxu1 %v1356_v40  ;;  %2260 = vmatpush3.msra.mxu0 %v1444_v46 }
 0x20d   :  { %2253 = vmatmul.mubr.msk.f32.vlgmr.msra.gmra.mxu1 %vm1048_vm6, %v1033_v17  ;;  %2266 = vmatprep.subr.mxu1 %v2423_v0 }
 0x20e   :  { %2274 = vmatprep.mubr.msk.f32.mxu1 %vm2424_vm0, %v2423_v0  ;;  %2267 = vmatpush3.msra.mxu1 %v1530_v45 }
 0x20f   :  { %2268 = vmatprep.subr.mxu1 %v2423_v0  ;;  %2261 = vmatprep.subr.mxu0 %v2423_v0 }
 0x210   :  { %2269 = vmatpush3.msra.mxu1 %v1529_v47  ;;  %2262 = vmatpush3.msra.mxu0 %v1443_v48  ;;  %v2709_v47 = vand.u32 127, %v1761_v19  ;;  %v1834_v48 = vadd.s32 8, %v1772_v24 }
 0x211   :  { %2270 = vmatprep.subr.mxu1 %v2423_v0  ;;  %2277 = vmatprep.subr.mxu0 %v2423_v0 }
 0x212   :  { %2271 = vmatpush3.msra.mxu1 %v1528_v42  ;;  %vm1863_vm7 = vcmp.lt.s32.totalorder %v1772_v24, %v2709_v47  ;;  %vm1864_vm14 = vcmp.lt.s32.totalorder %v1834_v48, %v2709_v47 }
 0x213   :  { %2272 = vmatprep.subr.mxu1 %v2423_v0 }
 0x214   :  { %2273 = vmatpush3.msra.mxu1 %v1527_v43 }
 0x215   :  { %2288 = vmatprep.subr.mxu1 %v2423_v0 }
 0x2ba   :  { %v1189_v49 = vpop.f32.mrf.mxu0 }
 0x2bc   :  { %v2221_v50 = vpop.f32.mrf.mxu0 }
 0x2bd   :  { %v1117_v51 = vpop.f32.mrf.mxu1 }
 0x2be   :  { %v1190_v56 = vadd.f32 %v1189_v49, %v1117_v51  ;;  %v1835_v49 = vadd.s32 16, %v1772_v24 }
 0x2bf   :  { %v2210_v52 = vpop.f32.mrf.mxu1 }
 0x2c2   :  { %v1350_v53 = vpop.f32.mrf.mxu0 }
 0x2c4   :  { %v2243_v54 = vpop.f32.mrf.mxu0 }
 0x2c5   :  { %v1269_v55 = vpop.f32.mrf.mxu1 }
 0x2c6   :  { %v1273_v58 = vadd.f32 %v1269_v55, %v1190_v56 }
 0x2c7   :  { %v2232_v57 = vpop.f32.mrf.mxu1 }
 0x2c8   :  { %v1354_v59 = vadd.f32 %v1350_v53, %v1273_v58  ;;  %v1836_v53 = vadd.s32 24, %v1772_v24 }
 0x2cd   :  { %v1428_v60 = vpop.f32.mrf.mxu1 }
 0x2ce   :  { %v1432_v62 = vadd.f32 %v1428_v60, %v1354_v59 }
 0x2cf   :  { %v2254_v63 = vpop.f32.mrf.mxu1 }
 0x2d0   :  { %v1440_v1 = vadd.f32 %v1980_v61, %v1432_v62 }
 0x2d2   :  { %v1441_v2 = vmax.f32 %v1440_v1, 0.0 }
 0x2d4   :  { %v1531_v4 = vrot.slane %v1441_v2, 2  ;;  %2264 = vmatmul.mubr.msk.f32.vlgmr.msra.gmra.mxu0 %vm1048_vm6, %v1441_v2  ;;  %v1609_v11 = vrot.slane %v1441_v2, 4  ;;  %v1687_v13 = vrot.slane %v1441_v2, 6 }
 0x2d5   :  { %2278 = vmatpush3.msra.mxu0 %v1608_v3  ;;  %2285 = vmatprep.mubr.msk.f32.mxu0 %vm2424_vm0, %v2423_v0 }
 0x2d6   :  { %2279 = vmatprep.subr.mxu0 %v2423_v0  ;;  %2275 = vmatmul.mubr.msk.f32.vlgmr.msra.gmra.mxu1 %vm1048_vm6, %v1531_v4 }
 0x2d7   :  { %2280 = vmatpush3.msra.mxu0 %v1607_v5  ;;  %2289 = vmatpush3.msra.mxu1 %v1686_v6 }
 0x2d8   :  { %2281 = vmatprep.subr.mxu0 %v2423_v0  ;;  %2290 = vmatprep.subr.mxu1 %v2423_v0 }
 0x2d9   :  { %2282 = vmatpush3.msra.mxu0 %v1606_v7  ;;  %2291 = vmatpush3.msra.mxu1 %v1685_v8 }
 0x2da   :  { %2283 = vmatprep.subr.mxu0 %v2423_v0  ;;  %2292 = vmatprep.subr.mxu1 %v2423_v0 }
 0x2db   :  { %2284 = vmatpush3.msra.mxu0 %v1605_v9  ;;  %2293 = vmatpush3.msra.mxu1 %v1684_v10 }
 0x2dc   :  { %2286 = vmatmul.mubr.msk.f32.vlgmr.msra.gmra.mxu0 %vm1048_vm6, %v1609_v11  ;;  %2294 = vmatprep.subr.mxu1 %v2423_v0 }
 0x2dd   :  { %2295 = vmatpush3.msra.mxu1 %v1683_v12  ;;  %2296 = vmatprep.mubr.msk.f32.mxu1 %vm2424_vm0, %v2423_v0 }
 0x2de   :  { %2297 = vmatmul.mubr.msk.f32.vlgmr.msra.gmra.mxu1 %vm1048_vm6, %v1687_v13 }
 0x394   :  { %v1516_v15 = vpop.f32.mrf.mxu0 }
 0x395   :  { %v1526_v18 = vadd.f32 %v1982_v14, %v1516_v15 }
 0x396   :  { %v2265_v16 = vpop.f32.mrf.mxu0  ;;  %v1600_v17 = vpop.f32.mrf.mxu1 }
 0x397   :  { %v1604_v23 = vadd.f32 %v1600_v17, %v1526_v18 }
 0x398   :  { %v2276_v22 = vpop.f32.mrf.mxu1 }
 0x39c   :  { %v1678_v26 = vpop.f32.mrf.mxu0 }
 0x39d   :  { %v1682_v27 = vadd.f32 %v1678_v26, %v1604_v23 }
 0x39e   :  { %v2287_v28 = vpop.f32.mrf.mxu0  ;;  %v1756_v29 = vpop.f32.mrf.mxu1 }
 0x39f   :  { %v1760_v31 = vadd.f32 %v1756_v29, %v1682_v27 }
 0x3a0   :  { %v2298_v35 = vpop.f32.mrf.mxu1 }
 0x3a1   :  { %v1770_v36 = vmul.f32 %v1986_v30, %v1760_v31 }
 0x3a3   :  { %v1774_v37 = vrot.slane %v1770_v36, %v1773_v32  ;;  %v1793_v38 = vrot.slane %v1770_v36, %v1792_v33  ;;  %v1816_v39 = vrot.slane %v1770_v36, %v1815_v34 }
 0x3a5   :  { %v1817_v40 = vcombine.high %v1816_v39, %v1816_v39  ;;  %v1824_v41 = vrot.slane %v1816_v39, %v1815_v34  ;;  %1795 = vbcast.lane.b32.xlu0 %v1793_v38, 256  ;;  %1776 = vbcast.lane.b32.xlu1 %v1774_v37, 256 }
 0x3a7   :  { %v1831_v44 = vrot.slane %v1817_v40, %v1815_v34  ;;  %v2707_v45 = vrot.slane %v1824_v41, %v1773_v32 }
 0x3a9   :  { %v1844_v46 = vrot.slane %v1831_v44, %v1773_v32  ;;  %1799 = vbcast.lane.b32.xlu0 %v1793_v38, 264  ;;  %1780 = vbcast.lane.b32.xlu1 %v1774_v37, 264 }
 0x3ad   :  { %1803 = vbcast.lane.b32.xlu0 %v1793_v38, 272  ;;  %1784 = vbcast.lane.b32.xlu1 %v1774_v37, 272 }
 0x3b1   :  { %1807 = vbcast.lane.b32.xlu0 %v1793_v38, 280  ;;  %1788 = vbcast.lane.b32.xlu1 %v1774_v37, 280 }
 0x417   :  { %v1796_v42 = vpop.permute.xlu0 %1795  ;;  %v1777_v43 = vpop.permute.xlu1 %1776 }
 0x418   :  { %vm1851_vm8 = vcmp.gt.f32.partialorder %v1796_v42, %v1844_v46  ;;  %vm1859_vm9 = vcmp.eq.f32.partialorder %v1796_v42, %v1844_v46  ;;  %vm1855_vm10 = vcmp.eq.f32.partialorder %v1777_v43, %v2707_v45  ;;  %vm1847_vm12 = vcmp.gt.f32.partialorder %v1777_v43, %v2707_v45 }
 0x419   :  { %vm1871_vm11 = vmand %vm1859_vm9, %vm1863_vm7 }
 0x41a   :  { %vm1879_vm13 = vmor %vm1851_vm8, %vm1871_vm11  ;;  %vm1865_vm8 = vcmp.lt.s32.totalorder %v1835_v49, %v2709_v47 }
 0x41b   :  { %vm1867_vm15 = vmand %vm1855_vm10, %vm1863_vm7  ;;  %v1800_v50 = vpop.permute.xlu0 %1799  ;;  %v1781_v51 = vpop.permute.xlu1 %1780  ;;  %v1991_v54 = vsel %vm1879_vm13, 1.0, %v2423_v0 }
 0x41c   :  { %vm2715_vm0 = vmor %vm1847_vm12, %vm1867_vm15  ;;  %vm1852_vm1 = vcmp.gt.f32.partialorder %v1800_v50, %v1844_v46  ;;  %vm1860_vm2 = vcmp.eq.f32.partialorder %v1800_v50, %v1844_v46  ;;  %vm1856_vm3 = vcmp.eq.f32.partialorder %v1781_v51, %v2707_v45  ;;  %vm1848_vm5 = vcmp.gt.f32.partialorder %v1781_v51, %v2707_v45 }
 0x41d   :  { %vm1872_vm4 = vmand %vm1860_vm2, %vm1864_vm14  ;;  %v1987_v59 = vsel %vm2715_vm0, 1.0, %v2423_v0 }
 0x41e   :  { %vm1880_vm6 = vmor %vm1852_vm1, %vm1872_vm4  ;;  %vm1866_vm1 = vcmp.lt.s32.totalorder %v1836_v53, %v2709_v47 }
 0x41f   :  { %v1992_v55 = vsel %vm1880_vm6, 1.0, %v2423_v0  ;;  %vm1868_vm7 = vmand %vm1856_vm3, %vm1864_vm14  ;;  %v1804_v56 = vpop.permute.xlu0 %1803  ;;  %v1785_v57 = vpop.permute.xlu1 %1784 }
 0x420   :  { %v1908_v58 = vadd.f32 %v1992_v55, %v1991_v54  ;;  %vm1876_vm9 = vmor %vm1848_vm5, %vm1868_vm7  ;;  %vm1853_vm10 = vcmp.gt.f32.partialorder %v1804_v56, %v1844_v46  ;;  %vm1861_vm11 = vcmp.eq.f32.partialorder %v1804_v56, %v1844_v46  ;;  %vm1849_vm13 = vcmp.gt.f32.partialorder %v1785_v57, %v2707_v45 }
 0x421   :  { %v1988_v60 = vsel %vm1876_vm9, 1.0, %v2423_v0  ;;  %vm1873_vm12 = vmand %vm1861_vm11, %vm1865_vm8  ;;  %vm1857_vm15 = vcmp.eq.f32.partialorder %v1785_v57, %v2707_v45  ;;  %vm1919_vm11 = vcmp.lt.s32.totalorder %v2709_v47, 32 }
 0x422   :  { %v1899_v61 = vadd.f32 %v1988_v60, %v1987_v59  ;;  %vm1881_vm14 = vmor %vm1853_vm10, %vm1873_vm12 }
 0x423   :  { %v1993_v62 = vsel %vm1881_vm14, 1.0, %v2423_v0  ;;  %vm1869_vm2 = vmand %vm1857_vm15, %vm1865_vm8  ;;  %v1808_v63 = vpop.permute.xlu0 %1807  ;;  %v1789_v1 = vpop.permute.xlu1 %1788  ;;  %vm1927_vm14 = vcmask 1041409  }
 0x424   :  { %v1909_v2 = vadd.f32 %v1993_v62, %v1908_v58  ;;  %vm1877_vm0 = vmor %vm1849_vm13, %vm1869_vm2  ;;  %vm1854_vm3 = vcmp.gt.f32.partialorder %v1808_v63, %v1844_v46  ;;  %vm1862_vm4 = vcmp.eq.f32.partialorder %v1808_v63, %v1844_v46  ;;  %vm1850_vm6 = vcmp.gt.f32.partialorder %v1789_v1, %v2707_v45 }
 0x425   :  { %v1989_v3 = vsel %vm1877_vm0, 1.0, %v2423_v0  ;;  %vm1874_vm5 = vmand %vm1862_vm4, %vm1866_vm1  ;;  %vm1858_vm7 = vcmp.eq.f32.partialorder %v1789_v1, %v2707_v45 }
 0x426   :  { %v1900_v4 = vadd.f32 %v1989_v3, %v1899_v61  ;;  %vm1882_vm9 = vmor %vm1854_vm3, %vm1874_vm5 }
 0x427   :  { %v1994_v5 = vsel %vm1882_vm9, 1.0, %v2423_v0  ;;  %vm1870_vm8 = vmand %vm1858_vm7, %vm1866_vm1 }
 0x428   :  { %v1910_v6 = vadd.f32 %v1994_v5, %v1909_v2  ;;  %vm1878_vm10 = vmor %vm1850_vm6, %vm1870_vm8 }
 0x429   :  { %v1990_v7 = vsel %vm1878_vm10, 1.0, %v2423_v0 }
 0x42a   :  { %v1911_v8 = vrot.slane %v1910_v6, 4  ;;  %v1901_v9 = vadd.f32 %v1990_v7, %v1900_v4 }
 0x42c   :  { %v1912_v10 = vadd.f32 %v1911_v8, %v1910_v6  ;;  %v1902_v11 = vrot.slane %v1901_v9, 4 }
 0x42e   :  { %v1913_v12 = vrot.slane %v1912_v10, 2  ;;  %v1903_v13 = vadd.f32 %v1902_v11, %v1901_v9 }
 0x430   :  { %v1914_v14 = vadd.f32 %v1913_v12, %v1912_v10  ;;  %v1904_v15 = vrot.slane %v1903_v13, 2 }
 0x432   :  { %v1915_v16 = vrot.slane %v1914_v14, 1  ;;  %v1905_v17 = vadd.f32 %v1904_v15, %v1903_v13 }
 0x434   :  { %v1906_v18 = vrot.slane %v1905_v17, 1  ;;  %v1916_v19 = vadd.f32 %v1915_v16, %v1914_v14 }
 0x436   :  { %v1907_v20 = vadd.f32 %v1906_v18, %v1905_v17  ;;  %vm1918_vm12 = vcmp.lt.f32.partialorder %v1916_v19, 8.0 }
 0x437   :  { %vm1921_vm13 = vmand %vm1918_vm12, %vm1919_vm11 }
 0x438   :  { %vm1917_vm15 = vcmp.lt.f32.partialorder %v1907_v20, 8.0  ;;  %v1923_v21 = vsel %vm1921_vm13, 1.0, %v2423_v0 }
 0x439   :  { %vm1920_vm1 = vmand %vm1917_vm15, %vm1919_vm11  ;;  %v1926_v22 = vrot.slane %v1923_v21, 7 }
 0x43a   :  { %v1922_v23 = vsel %vm1920_vm1, 1.0, %v2423_v0 }
 0x43b   :  { %v1928_v24 = vsel %vm1927_vm14, %v1926_v22, %v1922_v23 }
 0x43c   :  { %1930 = vst [vmem:[#allocation10] sm:$0x3] %v1928_v24 }
 0x43d   :  { %2400 = shalt.err (!%p2397_p10)
}
 0x43e   :  { %1940 = dma.vmem_to_hbm [thread:$0]  %s1938_s9, 32, %s2765_s10, [#allocation4]  }
 0x43f   :  { %2415 = dma.done.wait [#allocation4], 32  }
 0x440   :  { %2416 = vsyncadd [#allocation4], 4294967264 }
 0x441   :  { %1944 = vsyncpa [#allocation3], 1 }
 0x442   :  { %1945 = vsyncpa [#allocation6], 1 }
 0x443   :  { %1946 = vsyncpa [#allocation9], 1 }
 0x444   :  { %1947 = vsyncpa [#allocation4], 1 }

</bundles_post_ra>
